<compile_context>
chip_gen: v7x
topology: tpu7x:2x2x1
jax: 0.10.0
libtpu: 0.0.40
codegen_flags: <defaults>
</compile_context>

<pallas_src>
import functools

import jax
import jax.numpy as jnp
from jax import lax
from jax.experimental import pallas as pl
from jax.experimental.pallas import tpu as pltpu


def _mc_head_kernel(ids_ref, h_hbm, w_ref, b_ref, out_ref, gath, sem, *,
                    n_rows, seq_len, chunk):
    """Gather one seq position per row via DMA, then (1,E)@(E,CHUNK) + bias."""
    c = pl.program_id(0)
    base = c * chunk
    rows_here = jnp.minimum(chunk, n_rows - base)   # >= 1 by construction

    # Zero the gather buffer only on the (last) partial chunk so padded lanes
    # produce a deterministic value (= bias) instead of stale VMEM.
    @pl.when(rows_here < chunk)
    def _():
        gath[...] = jnp.zeros_like(gath)

    # Issue all row-gather DMAs for this chunk concurrently; every copy
    # signals the SAME shared DMA semaphore (no per-row sem array).
    def _issue(r, carry):
        row = base + r
        idx = jnp.clip(ids_ref[row], 0, seq_len - 1)   # avoid OOB HBM read
        pltpu.make_async_copy(
            h_hbm.at[row, pl.ds(idx, 1), :],   # (1, E) row in HBM
            gath.at[pl.ds(r, 1), :],           # (1, E) row in VMEM scratch
            sem.at[0],
        ).start()
        return carry
    lax.fori_loop(0, rows_here, _issue, 0)

    # Drain: each wait consumes exactly one (1, E) copy's completion from the
    # shared semaphore; after rows_here waits all copies have landed.
    def _drain(r, carry):
        pltpu.make_async_copy(
            h_hbm.at[0, pl.ds(0, 1), :],       # shape-only descriptor (same size)
            gath.at[pl.ds(r, 1), :],
            sem.at[0],
        ).wait()
        return carry
    lax.fori_loop(0, rows_here, _drain, 0)

    # Linear(E -> 1), lane-dense: w (1, E) . gath^T (E, CHUNK) -> (1, CHUNK)
    # so rows land on lanes and the output store is an unmasked 128-lane vst.
    logits = lax.dot_general(
        w_ref[...], gath[...],
        dimension_numbers=(((1,), (1,)), ((), ())),
        precision=lax.Precision.HIGHEST,
        preferred_element_type=jnp.float32,
    )
    out_ref[...] = logits + b_ref[0]


def multiple_choice_head(hidden_states, mc_token_ids, weight, bias, *, chunk=128):
    """hidden_states (B,C,S,E), mc_token_ids (B,C) int,
    weight (1,E) (torch Linear layout: (out_features, in_features)), bias (1,)."""
    B, C, S, E = hidden_states.shape
    N = B * C
    num_chunks = (N + chunk - 1) // chunk
    n_lanes = num_chunks * chunk

    h_flat = hidden_states.reshape(N, S, E)
    ids_flat = mc_token_ids.reshape(N).astype(jnp.int32)
    w = weight.astype(hidden_states.dtype)      # matmul in input dtype, f32 acc
    b = bias.astype(jnp.float32)

    # TODO(synk): nn.Dropout2d is identity in eval mode; training-mode channel
    # dropout is not implemented here.
    kernel = functools.partial(_mc_head_kernel, n_rows=N, seq_len=S, chunk=chunk)

    itemsize = jnp.dtype(hidden_states.dtype).itemsize
    cost = pl.CostEstimate(
        flops=2 * N * E,
        transcendentals=0,
        bytes_accessed=N * E * itemsize + E * itemsize + N * 4 + n_lanes * 4,
    )

    out = pl.pallas_call(
        kernel,
        out_shape=jax.ShapeDtypeStruct((1, n_lanes), jnp.float32),
        grid_spec=pltpu.PrefetchScalarGridSpec(
            num_scalar_prefetch=1,          # mc_token_ids -> SMEM
            grid=(num_chunks,),
            in_specs=[
                pl.BlockSpec(memory_space=pl.ANY),                  # hidden stays in HBM
                pl.BlockSpec((1, E), lambda c, ids: (0, 0)),        # weight, resident in VMEM
                pl.BlockSpec(memory_space=pltpu.MemorySpace.SMEM),  # bias scalar
            ],
            out_specs=pl.BlockSpec((1, chunk), lambda c, ids: (0, c)),  # lane-dense row
            scratch_shapes=[
                pltpu.VMEM((chunk, E), hidden_states.dtype),   # gathered rows (per chunk)
                pltpu.SemaphoreType.DMA((1,)),                 # single shared DMA sem
            ],
        ),
        compiler_params=pltpu.CompilerParams(
            dimension_semantics=("parallel",)),    # chunks shard across v7x TCs
        cost_estimate=cost,
    )(ids_flat, h_flat, w, b)

    return out[0, :N].reshape(B, C)


if __name__ == "__main__":
    B, C, S, E = 2, 4, 16, 128   # batch, num_choices, seq_len, n_embd

    key = jax.random.PRNGKey(0)
    k_h, k_ids, k_w, k_b = jax.random.split(key, 4)

    hidden_states = jax.random.normal(k_h, (B, C, S, E), dtype=jnp.float32)
    mc_token_ids = jax.random.randint(k_ids, (B, C), 0, S, dtype=jnp.int32)

    # Deterministic "module" parameters: Linear(n_embd, 1)
    #   weight ~ N(0, 0.02), bias ~ N(0, 1)   (per nn.init.normal_ in the module)
    weight = 0.02 * jax.random.normal(k_w, (1, E), dtype=jnp.float32)  # torch (out, in)
    bias = jax.random.normal(k_b, (1,), dtype=jnp.float32)

    logits = multiple_choice_head(hidden_states, mc_token_ids, weight, bias)
    logits = jax.block_until_ready(logits)

    # Pure-JAX reference for correctness.
    gathered = jnp.take_along_axis(
        hidden_states,
        mc_token_ids[:, :, None, None].astype(jnp.int32).repeat(E, axis=-1),
        axis=2,
    )[:, :, 0, :]                            # (B, C, E)
    ref = jnp.einsum("bce,e->bc", gathered, weight[0],
                     precision="highest") + bias[0]

    assert logits.shape == (B, C)
    # Tolerance covers a possible reduced-precision MXU pass for the f32 dot;
    # any gather/linear bug would be off by O(0.1-1).
    assert jnp.allclose(logits, ref, atol=2e-3, rtol=1e-3)
    print("KERNEL_OK")
</pallas_src>

<mosaic_0001>
module attributes {stable_mosaic.version = 11 : i64} {
  func.func @_mc_head_kernel(%arg0: i32, %arg1: memref<8xi32, #tpu.memory_space<smem>>, %arg2: memref<8x16x128xf32, #tpu.memory_space<any>>, %arg3: memref<1x128xf32, #tpu.memory_space<vmem>>, %arg4: memref<1xf32, #tpu.memory_space<smem>>, %arg5: memref<1x128xf32, #tpu.memory_space<vmem>>, %arg6: memref<128x128xf32, #tpu.memory_space<vmem>>, %arg7: memref<1x!tpu.dma_semaphore, #tpu.memory_space<semaphore_mem>>) attributes {dimension_semantics = [#tpu.dimension_semantics<parallel>], iteration_bounds = array<i64: 1>, scalar_prefetch = 1 : i64, scratch_operands = 2 : i64, tpu.core_type = #tpu.core_type<tc>, window_params = [{}, {pipeline_mode = #tpu.pipeline_mode<synchronous>, transform_indices = @transform_1, window_bounds = array<i64: 1, 128>}, {transform_indices = @transform_2, window_bounds = array<i64: 1>}, {transform_indices = @transform_3, window_bounds = array<i64: 1, 128>}]} {
    %c128_i32 = arith.constant 128 : i32
    %0 = arith.muli %arg0, %c128_i32 : i32
    %c8_i32 = arith.constant 8 : i32
    %1 = arith.subi %c8_i32, %0 : i32
    %c128_i32_0 = arith.constant 128 : i32
    %2 = arith.minsi %c128_i32_0, %1 : i32
    %c128_i32_1 = arith.constant 128 : i32
    %3 = arith.cmpi slt, %2, %c128_i32_1 : i32
    %4 = arith.extui %3 : i1 to i32
    %c0_i32 = arith.constant 0 : i32
    %5 = arith.cmpi ne, %4, %c0_i32 : i32
    scf.if %5 {
      %cst_13 = arith.constant 0.000000e+00 : f32
      %17 = vector.broadcast %cst_13 : f32 to vector<128x128xf32>
      %c0_14 = arith.constant 0 : index
      %c0_15 = arith.constant 0 : index
      %18 = vector.load %arg6[%c0_14, %c0_15] : memref<128x128xf32, #tpu.memory_space<vmem>>, vector<128x128xf32>
      tpu.vector_store %arg6[%c0_14, %c0_15], %17 {strides = array<i32>} : memref<128x128xf32, #tpu.memory_space<vmem>>, vector<128x128xf32>,
    } else {
    }
    %c0_i32_2 = arith.constant 0 : i32
    %c0_i32_3 = arith.constant 0 : i32
    %6 = arith.subi %2, %c0_i32_3 : i32
    %7 = arith.addi %c0_i32_3, %6 : i32
    %c1_i32 = arith.constant 1 : i32
    scf.for %arg8 = %c0_i32_3 to %7 step %c1_i32  : i32 {
      %17 = arith.addi %0, %arg8 : i32
      %18 = arith.index_cast %17 : i32 to index
      %19 = memref.load %arg1[%18] : memref<8xi32, #tpu.memory_space<smem>>
      %c0_i32_13 = arith.constant 0 : i32
      %c15_i32 = arith.constant 15 : i32
      %20 = arith.maxsi %c0_i32_13, %19 : i32
      %21 = arith.minsi %c15_i32, %20 : i32
      %c0_i32_14 = arith.constant 0 : i32
      %c0_i32_15 = arith.constant 0 : i32
      %22 = tpu.memref_slice %arg2[%17, %21, %c0_i32_15] : memref<8x16x128xf32, #tpu.memory_space<any>> -> memref<1x1x128xf32, #tpu.memory_space<any>>
      %23 = tpu.memref_squeeze %22 : memref<1x1x128xf32, #tpu.memory_space<any>> -> memref<1x128xf32, #tpu.memory_space<any>>
      %c0_i32_16 = arith.constant 0 : i32
      %24 = tpu.memref_slice %arg6[%arg8, %c0_i32_16] : memref<128x128xf32, #tpu.memory_space<vmem>> -> memref<1x128xf32, #tpu.memory_space<vmem>>
      %25 = tpu.memref_slice %arg7[%c0_i32_14] : memref<1x!tpu.dma_semaphore, #tpu.memory_space<semaphore_mem>> -> memref<1x!tpu.dma_semaphore, #tpu.memory_space<semaphore_mem>>
      %26 = tpu.memref_squeeze %25 : memref<1x!tpu.dma_semaphore, #tpu.memory_space<semaphore_mem>> -> memref<!tpu.dma_semaphore, #tpu.memory_space<semaphore_mem>>
      tpu.enqueue_dma source(%23 : memref<1x128xf32, #tpu.memory_space<any>>) target(%24 : memref<1x128xf32, #tpu.memory_space<vmem>>) target_semaphore(%26 : memref<!tpu.dma_semaphore, #tpu.memory_space<semaphore_mem>>)
    }
    %c0_i32_4 = arith.constant 0 : i32
    %c0_i32_5 = arith.constant 0 : i32
    %8 = arith.subi %2, %c0_i32_5 : i32
    %9 = arith.addi %c0_i32_5, %8 : i32
    %c1_i32_6 = arith.constant 1 : i32
    scf.for %arg8 = %c0_i32_5 to %9 step %c1_i32_6  : i32 {
      %c0_i32_13 = arith.constant 0 : i32
      %c0_i32_14 = arith.constant 0 : i32
      %c0_i32_15 = arith.constant 0 : i32
      %c0_i32_16 = arith.constant 0 : i32
      %17 = tpu.memref_slice %arg2[%c0_i32_13, %c0_i32_15, %c0_i32_16] : memref<8x16x128xf32, #tpu.memory_space<any>> -> memref<1x1x128xf32, #tpu.memory_space<any>>
      %18 = tpu.memref_squeeze %17 : memref<1x1x128xf32, #tpu.memory_space<any>> -> memref<1x128xf32, #tpu.memory_space<any>>
      %c0_i32_17 = arith.constant 0 : i32
      %19 = tpu.memref_slice %arg6[%arg8, %c0_i32_17] : memref<128x128xf32, #tpu.memory_space<vmem>> -> memref<1x128xf32, #tpu.memory_space<vmem>>
      %20 = tpu.memref_slice %arg7[%c0_i32_14] : memref<1x!tpu.dma_semaphore, #tpu.memory_space<semaphore_mem>> -> memref<1x!tpu.dma_semaphore, #tpu.memory_space<semaphore_mem>>
      %21 = tpu.memref_squeeze %20 : memref<1x!tpu.dma_semaphore, #tpu.memory_space<semaphore_mem>> -> memref<!tpu.dma_semaphore, #tpu.memory_space<semaphore_mem>>
      tpu.wait_dma2 semaphore(%21 : memref<!tpu.dma_semaphore, #tpu.memory_space<semaphore_mem>>) src(%18 : memref<1x128xf32, #tpu.memory_space<any>>) dst(%19 : memref<1x128xf32, #tpu.memory_space<vmem>>)
    }
    %c0 = arith.constant 0 : index
    %c0_7 = arith.constant 0 : index
    %10 = vector.load %arg3[%c0, %c0_7] : memref<1x128xf32, #tpu.memory_space<vmem>>, vector<1x128xf32>
    %c0_8 = arith.constant 0 : index
    %c0_9 = arith.constant 0 : index
    %11 = vector.load %arg6[%c0_8, %c0_9] : memref<128x128xf32, #tpu.memory_space<vmem>>, vector<128x128xf32>
    %cst = arith.constant dense<0.000000e+00> : vector<1x128xf32>
    %12 = tpu.matmul %10, %11, %cst {dimension_numbers = #tpu.dot_dimension_numbers<[1], [1], [0], [0], [0, 0, 1, 0], [], []>, precision = #tpu.contract_precision<fp32>} : vector<1x128xf32>, vector<128x128xf32>, vector<1x128xf32> -> vector<1x128xf32>
    %c0_10 = arith.constant 0 : index
    %13 = memref.load %arg4[%c0_10] : memref<1xf32, #tpu.memory_space<smem>>
    %14 = vector.broadcast %13 : f32 to vector<1x128xf32>
    %15 = arith.addf %12, %14 : vector<1x128xf32>
    %c0_11 = arith.constant 0 : index
    %c0_12 = arith.constant 0 : index
    %16 = vector.load %arg5[%c0_11, %c0_12] : memref<1x128xf32, #tpu.memory_space<vmem>>, vector<1x128xf32>
    tpu.vector_store %arg5[%c0_11, %c0_12], %15 {strides = array<i32>} : memref<1x128xf32, #tpu.memory_space<vmem>>, vector<1x128xf32>,
    return
  }
  func.func @transform_1(%arg0: i32, %arg1: memref<8xi32, #tpu.memory_space<smem>>) -> (i32, i32) {
    %c0_i32 = arith.constant 0 : i32
    %c0_i32_0 = arith.constant 0 : i32
    %c0_i32_1 = arith.constant 0 : i32
    return %c0_i32, %c0_i32_0 : i32, i32
  }
  func.func @transform_2(%arg0: i32, %arg1: memref<8xi32, #tpu.memory_space<smem>>) -> i32 {
    %c0_i32 = arith.constant 0 : i32
    %c0_i32_0 = arith.constant 0 : i32
    return %c0_i32 : i32
  }
  func.func @transform_3(%arg0: i32, %arg1: memref<8xi32, #tpu.memory_space<smem>>) -> (i32, i32) {
    %c0_i32 = arith.constant 0 : i32
    %c0_i32_0 = arith.constant 0 : i32
    return %c0_i32, %arg0 : i32, i32
  }
}

</mosaic_0001>

<bundles_post_ra>
// kernel: tpu_custom_call.1
= control target key start
LH: loop header
LB: loop body
LE: loop exit
PB: predicated region body
PF: predicated region fallthrough
CT: control target
= control target key end

     0   :  { %s1658_s0 = inlined_call_operand.vmem [shape: s32[8], index: 0, kind: input, shape index: {}]   ;;  %s1659_s1 = inlined_call_operand.hbm [shape: f32[8,16,128], index: 1, kind: input, shape index: {}]   ;;  %s1660_s2 = inlined_call_operand.vmem [shape: f32[1,128], index: 2, kind: input, shape index: {}]   ;;  %s1661_s3 = inlined_call_operand.<no memory space> [shape: f32[1], index: 3, kind: input, shape index: {}]   ;;  %s1662_s4 = inlined_call_operand.hbm [shape: f32[1,128], index: 4, kind: output, shape index: {}]  }
   0x1   :  { %s9_s17 = sshll.u32 %s1658_s0, 4  ;;  %13 = sst [smem:[#allocation6]] %s1661_s3  ;;  %s10_s17 = int_to_ptr.vmem [resolvable:$true] %s9_s17 }
   0x2   :  { %s1275_s20 = scalar_lea.vmem %s10_s17, 16  ;;  %p1280_p1 = scmp.lt.s32.totalorder %s10_s17, %s10_s17 }
   0x3   :  { %p1276_p0 = scmp.ne.s32.totalorder %s10_s17, %s1275_s20  ;;  %p1281_p2 = scmp.lt.s32.totalorder %s1275_s20, %s1275_s20 }
   0x5   :  { %p1282_p3 = por %p1281_p2, %p1280_p1 }
   0x7   :  { %p1283_p4 = pnand %p1282_p3, %p1276_p0 }
   0x9   :  { %1286 = shalt.err (!%p1283_p4)  }
   0xa   :  { %s1355_s21 = smov [#allocation5]  }
   0xb   :  { %12 = dma.vmem_to_smem %s10_s17, 16, %s1355_s21, [#allocation4] }
   0xc   :  { %1341 = dma.done.wait [#allocation4], 16 }
   0xd   :  { %1342 = vsyncadd [#allocation4], 4294967280 }
   0xe   :  { %15 = sfence }
   0xf   :  { %16 = vsyncpa [#allocation8], 0  ;;  %v1356_v0 = vmov 0.0   ;;  %s1408_s0 = smov 0  }
  0x10   :  { %29 = vst [vmem:[#allocation2] sm:$0xff] %v1356_v0  ;;  %30 = vst [vmem:[#allocation2 + $0x8] sm:$0xff] %v1356_v0 }
  0x11   :  { %31 = vst [vmem:[#allocation2 + $0x10] sm:$0xff] %v1356_v0  ;;  %32 = vst [vmem:[#allocation2 + $0x18] sm:$0xff] %v1356_v0 }
  0x12   :  { %33 = vst [vmem:[#allocation2 + $0x20] sm:$0xff] %v1356_v0  ;;  %34 = vst [vmem:[#allocation2 + $0x28] sm:$0xff] %v1356_v0 }
  0x13   :  { %35 = vst [vmem:[#allocation2 + $0x30] sm:$0xff] %v1356_v0  ;;  %36 = vst [vmem:[#allocation2 + $0x38] sm:$0xff] %v1356_v0 }
  0x14   :  { %37 = vst [vmem:[#allocation2 + $0x40] sm:$0xff] %v1356_v0  ;;  %38 = vst [vmem:[#allocation2 + $0x48] sm:$0xff] %v1356_v0 }
  0x15   :  { %39 = vst [vmem:[#allocation2 + $0x50] sm:$0xff] %v1356_v0  ;;  %40 = vst [vmem:[#allocation2 + $0x58] sm:$0xff] %v1356_v0 }
  0x16   :  { %41 = vst [vmem:[#allocation2 + $0x60] sm:$0xff] %v1356_v0  ;;  %42 = vst [vmem:[#allocation2 + $0x68] sm:$0xff] %v1356_v0 }
  0x17   :  { %43 = vst [vmem:[#allocation2 + $0x70] sm:$0xff] %v1356_v0  ;;  %44 = vst [vmem:[#allocation2 + $0x78] sm:$0xff] %v1356_v0 }
  0x18 LB: > { %s52_s3 = sld [smem:[#allocation5 + %s1349_s0]]  ;;  %s783_s22 = sshll.u32 %s1349_s0, 4  ;;  %s1349_s0 = sphi %s1408_s0, %s48_s0  }
  0x19   : > { %s61_s23 = scalar_lea.vmem [#allocation2], %s1349_s0  ;;  %s1289_s7 = scalar_lea.hbm %s1659_s1, 2048 }
  0x1a   : > { %s69_s24 = sshll.u32 %s61_s23, 4  ;;  %s70_s24 = int_to_ptr.vmem [resolvable:$true] %s69_s24 }
  0x1e   : > { %p53_p5 = scmp.gt.s32.totalorder %s52_s3, 0  ;;  %p778_p6 = scmp.lt.s32.totalorder %s52_s3, 15 }
  0x20   : > { %s1664_s3 = smov (!%p53_p5, %s52_s3), 0 }
  0x21   : > { %s1666_s3 = smov (!%p778_p6, %s1664_s3), 15 }
  0x22   : > { %s58_s25 = sadd.s32 %s1666_s3, %s783_s22 }
  0x23   : > { %s784_s26 = sshll.u32 %s58_s25, 4 }
  0x24   : > { %s60_s29 = scalar_lea.hbm %s1659_s1, %s784_s26 }
  0x25   : > { %s1287_s30 = scalar_lea.hbm %s60_s29, 16  ;;  %p1290_p8 = scmp.lt.u32.totalorder %s60_s29, %s1659_s1 }
  0x26   : > { %p1288_p7 = scmp.ne.s32.totalorder %s60_s29, %s1287_s30  ;;  %p1291_p9 = scmp.lt.u32.totalorder %s1289_s7, %s1287_s30 }
  0x27   : > { %p1293_p11 = scmp.lt.u32.totalorder %s1287_s30, %s60_s29 }
  0x28   : > { %p1292_p10 = por %p1291_p9, %p1290_p8 }
  0x2a   : > { %p1294_p12 = por %p1293_p11, %p1292_p10 }
  0x2c   : > { %p1295_p13 = pnand %p1294_p12, %p1288_p7 }
  0x2e   : > { %1298 = shalt.err (!%p1295_p13)  }
  0x2f   : > { %s1299_s10 = scalar_lea.vmem %s70_s24, 16  ;;  %s1357_s11 = smov [#allocation2]  }
  0x30   : > { %p1300_p0 = scmp.ne.s32.totalorder %s70_s24, %s1299_s10  ;;  %s1301_s12 = sshll.u32 %s1357_s11, 4  ;;  %s1302_s12 = int_to_ptr.vmem [resolvable:$false] %s1301_s12 }
  0x31   : > { %s1303_s13 = scalar_lea.vmem %s1302_s12, 2048  ;;  %p1304_p1 = scmp.lt.s32.totalorder %s70_s24, %s1302_s12 }
  0x32   : > { %p1305_p2 = scmp.lt.s32.totalorder %s1303_s13, %s1299_s10 }
  0x34   : > { %p1306_p3 = por %p1305_p2, %p1304_p1 }
  0x36   : > { %p1307_p4 = pnand %p1306_p3, %p1300_p0 }
  0x38   : > { %1310 = shalt.err (!%p1307_p4)  }
  0x39   : > { %72 = dma.hbm_to_vmem [thread:$0]  %s60_s29, 16, %s70_s24, [#allocation3] }
  0x3a   : > { %s48_s0 = sadd.s32 1, %s1349_s0  }
  0x3b   : > { %p47_p5 = scmp.ge.s32.totalorder %s48_s0, 8 }
  0x3c   :  { %s1351_s14 = smov (%p47_p5), 0  }
  0x3d   :  { %50 = sbr.rel (!%p47_p5) target bundleno = 24 (0x18), region = 52 }
  0x44 LB: > { %1343 = dma.done.wait [#allocation3], 16  ;;  %s1353_s14 = sphi %s1351_s14, %s76_s14  }
  0x45   : > { %1344 = vsyncadd [#allocation3], 4294967280  ;;  %s76_s14 = sadd.s32 1, %s1353_s14  }
  0x46   : > { %p75_p6 = scmp.ge.s32.totalorder %s76_s14, 8 }
  0x47   :  { %v83_v1 = vld [vmem:[#allocation2] sm:$0xff] (%p75_p6)  ;;  %v84_v2 = vld [vmem:[#allocation2 + $0x8] sm:$0xff] (%p75_p6)  ;;  %v1358_v3 = vmov (%p75_p6), 0.0|0.0   ;;  %v85_v6 = vld [vmem:[#allocation2 + $0x10] sm:$0xff] (%p75_p6)  ;;  %vm1359_vm0 = vmmov (%p75_p6), 0   ;;  %s1360_s16 = smov (%p75_p6), [#allocation7]  }
  0x48   :  { %78 = sbr.rel (!%p75_p6) target bundleno = 68 (0x44), region = 63  ;;  %1100 = vmatprep.subr.bf16.mxu1 (%p75_p6), %v1358_v3  ;;  %1172 = vmatprep.subr.bf16.mxu0 (%p75_p6), %v1358_v3  ;;  %v102_v4 = vand.u32 (%p75_p6), 4294901760, %v83_v1  ;;  %v105_v5 = vand.u32 (%p75_p6), 4294901760, %v84_v2  ;;  %v86_v7 = vld [vmem:[#allocation2 + $0x18] sm:$0xff] (%p75_p6)  ;;  %v108_v9 = vand.u32 (%p75_p6), 4294901760, %v85_v6  ;;  %v87_v12 = vld [vmem:[#allocation2 + $0x20] sm:$0xff] (%p75_p6) }
  0x49   :  { %922 = vmatprep.mubr.msk.f32.mxu1 (%p75_p6), %vm1359_vm0, %v1356_v0  ;;  %1027 = vmatprep.mubr.msk.f32.mxu0 (%p75_p6), %vm1359_vm0, %v1356_v0  ;;  %v111_v10 = vand.u32 (%p75_p6), 4294901760, %v86_v7  ;;  %v88_v13 = vld [vmem:[#allocation2 + $0x28] sm:$0xff] (%p75_p6)  ;;  %v114_v14 = vand.u32 (%p75_p6), 4294901760, %v87_v12  ;;  %v89_v17 = vld [vmem:[#allocation2 + $0x30] sm:$0xff] (%p75_p6)  ;;  %v90_v18 = vld [vmem:[#allocation2 + $0x38] sm:$0xff] (%p75_p6)  ;;  %s749_s17 = sshll.u32 (%p75_p6), %s1360_s16, 4  ;;  %s750_s17 = int_to_ptr.vmem [resolvable:$true] %s749_s17 }
  0x4a   :  { %v1434_v8 = vpack.c.bf16 (%p75_p6), %v105_v5, %v102_v4  ;;  %v117_v15 = vand.u32 (%p75_p6), 4294901760, %v88_v13  ;;  %v120_v19 = vand.u32 (%p75_p6), 4294901760, %v89_v17  ;;  %v123_v20 = vand.u32 (%p75_p6), 4294901760, %v90_v18  ;;  %v91_v23 = vld [vmem:[#allocation2 + $0x40] sm:$0xff] (%p75_p6)  ;;  %v92_v24 = vld [vmem:[#allocation2 + $0x48] sm:$0xff] (%p75_p6)  ;;  %v93_v41 = vld [vmem:[#allocation2 + $0x50] sm:$0xff] (%p75_p6)  ;;  %p1316_p8 = scmp.lt.s32.totalorder (%p75_p6), %s750_s17, %s750_s17 }
  0x4b   :  { %v1440_v11 = vpack.c.bf16 (%p75_p6), %v111_v10, %v108_v9  ;;  %v1452_v21 = vsub.f32 (%p75_p6), %v83_v1, %v102_v4  ;;  %v1454_v22 = vsub.f32 (%p75_p6), %v84_v2, %v105_v5  ;;  %v1456_v25 = vsub.f32 (%p75_p6), %v85_v6, %v108_v9  ;;  %v94_v42 = vld [vmem:[#allocation2 + $0x58] sm:$0xff] (%p75_p6)  ;;  %v95_v49 = vld [vmem:[#allocation2 + $0x60] sm:$0xff] (%p75_p6)  ;;  %v96_v50 = vld [vmem:[#allocation2 + $0x68] sm:$0xff] (%p75_p6)  ;;  %s1311_s18 = scalar_lea.vmem (%p75_p6), %s750_s17, 16  ;;  %s1315_s19 = scalar_lea.vmem (%p75_p6), %s750_s17, 32 }
  0x4c   :  { %1102 = vmatpush3.bf16.xpose.msra.mxu1 (%p75_p6), %v1434_v8  ;;  %1174 = vmatpush3.bf16.xpose.msra.mxu0 (%p75_p6), %v1434_v8  ;;  %v1446_v16 = vpack.c.bf16 (%p75_p6), %v117_v15, %v114_v14  ;;  %v1458_v26 = vsub.f32 (%p75_p6), %v86_v7, %v111_v10  ;;  %v1460_v27 = vsub.f32 (%p75_p6), %v87_v12, %v114_v14  ;;  %v126_v33 = vand.u32 (%p75_p6), 4294901760, %v91_v23  ;;  %v82_v56 = vld [vmem:[%s1660_s2] sm:$0x1] (%p75_p6)  ;;  %v97_v58 = vld [vmem:[#allocation2 + $0x70] sm:$0xff] (%p75_p6)  ;;  %v98_v59 = vld [vmem:[#allocation2 + $0x78] sm:$0xff] (%p75_p6)  ;;  %s99_s2 = sld [smem:[#allocation6]] (%p75_p6)  ;;  %p1312_p7 = scmp.ne.s32.totalorder (%p75_p6), %s750_s17, %s1311_s18 }
  0x4d   :  { %1103 = vmatprep.subr.bf16.mxu1 (%p75_p6), %v1358_v3  ;;  %1175 = vmatprep.subr.bf16.mxu0 (%p75_p6), %v1358_v3  ;;  %v1462_v28 = vsub.f32 (%p75_p6), %v88_v13, %v117_v15  ;;  %v1464_v29 = vpack.c.bf16 (%p75_p6), %v123_v20, %v120_v19  ;;  %v1149_v30 = vpack.c.bf16 (%p75_p6), %v1454_v22, %v1452_v21  ;;  %v129_v34 = vand.u32 (%p75_p6), 4294901760, %v92_v24  ;;  %p1317_p9 = scmp.lt.s32.totalorder (%p75_p6), %s1315_s19, %s1311_s18 }
  0x4e   :  { %v1468_v31 = vsub.f32 (%p75_p6), %v89_v17, %v120_v19  ;;  %v1470_v32 = vsub.f32 (%p75_p6), %v90_v18, %v123_v20  ;;  %v1152_v35 = vpack.c.bf16 (%p75_p6), %v1458_v26, %v1456_v25  ;;  %v1474_v36 = vsub.f32 (%p75_p6), %v91_v23, %v126_v33 }
  0x4f   :  { %v1476_v37 = vsub.f32 %v92_v24, %v129_v34  ;;  %v1155_v38 = vpack.c.bf16 %v1462_v28, %v1460_v27  ;;  %v1488_v43 = vpack.c.bf16 %v129_v34, %v126_v33  ;;  %v132_v44 = vand.u32 4294901760, %v93_v41  ;;  %p1318_p10 = por %p1317_p9, %p1316_p8 }
  0x50   :  { %v1158_v39 = vpack.c.bf16 %v1470_v32, %v1468_v31  ;;  %v135_v45 = vand.u32 4294901760, %v94_v42  ;;  %v138_v52 = vand.u32 4294901760, %v95_v49  ;;  %v141_v53 = vand.u32 4294901760, %v96_v50 }
  0x51   :  { %v1161_v40 = vpack.c.bf16 %v1476_v37, %v1474_v36  ;;  %v1490_v46 = vsub.f32 %v93_v41, %v132_v44  ;;  %v1515_v60 = vand.u32 4294901760, %v82_v56  ;;  %v144_v62 = vand.u32 4294901760, %v97_v58  ;;  %p1319_p11 = pnand %p1318_p10, %p1312_p7 }
  0x52   :  { %v1492_v47 = vsub.f32 %v94_v42, %v135_v45  ;;  %v1500_v51 = vpack.c.bf16 %v135_v45, %v132_v44  ;;  %v1502_v54 = vsub.f32 %v95_v49, %v138_v52  ;;  %v1504_v55 = vsub.f32 %v96_v50, %v141_v53 }
  0x53   :  { %v1517_v61 = vpack.c.bf16 %v141_v53, %v138_v52  ;;  %v147_v63 = vand.u32 4294901760, %v98_v59  ;;  %v1519_v1 = vsub.f32 %v97_v58, %v144_v62  ;;  %v1524_v4 = vsub.f32 %v82_v56, %v1515_v60 }
  0x54   :  { %1105 = vmatpush3.bf16.xpose.msra.mxu1 %v1440_v11  ;;  %1177 = vmatpush3.bf16.xpose.msra.mxu0 %v1440_v11  ;;  %v1164_v48 = vpack.c.bf16 %v1492_v47, %v1490_v46  ;;  %v1167_v57 = vpack.c.bf16 %v1504_v55, %v1502_v54  ;;  %v195_v5 = vand.u32 4294901760, %v1452_v21  ;;  %v202_v6 = vand.u32 4294901760, %v1454_v22 }
  0x55   :  { %1106 = vmatprep.subr.bf16.mxu1 %v1358_v3  ;;  %1178 = vmatprep.subr.bf16.mxu0 %v1358_v3  ;;  %v1521_v2 = vsub.f32 %v98_v59, %v147_v63  ;;  %v184_v9 = vand.u32 4294901760, %v1524_v4  ;;  %v1535_v10 = vpack.c.bf16 %v147_v63, %v144_v62  ;;  %v209_v18 = vand.u32 4294901760, %v1456_v25 }
  0x56   :  { %v196_v12 = vsub.f32 %v1452_v21, %v195_v5  ;;  %v203_v13 = vsub.f32 %v1454_v22, %v202_v6  ;;  %v216_v19 = vand.u32 4294901760, %v1458_v26  ;;  %v1197_v24 = vpack.c.bf16 %v202_v6, %v195_v5 }
  0x57   :  { %v1170_v7 = vpack.c.bf16 %v1521_v2, %v1519_v1  ;;  %v185_v14 = vsub.f32 %v1524_v4, %v184_v9  ;;  %v210_v33 = vsub.f32 %v1456_v25, %v209_v18  ;;  %v223_v44 = vand.u32 4294901760, %v1460_v27 }
  0x58   :  { %v197_v15 = vand.u32 4294901760, %v196_v12  ;;  %v204_v17 = vand.u32 4294901760, %v203_v13  ;;  %v217_v34 = vsub.f32 %v1458_v26, %v216_v19  ;;  %v230_v45 = vand.u32 4294901760, %v1462_v28 }
  0x59   :  { %v186_v20 = vand.u32 4294901760, %v185_v14  ;;  %v211_v41 = vand.u32 4294901760, %v210_v33  ;;  %v1200_v50 = vpack.c.bf16 %v216_v19, %v209_v18  ;;  %v224_v52 = vsub.f32 %v1460_v27, %v223_v44 }
  0x5a   :  { %v1125_v23 = vpack.c.bf16 %v204_v17, %v197_v15  ;;  %v218_v42 = vand.u32 4294901760, %v217_v34  ;;  %v231_v53 = vsub.f32 %v1462_v28, %v230_v45  ;;  %v237_v59 = vand.u32 4294901760, %v1468_v31 }
  0x5b   :  { %v225_v56 = vand.u32 4294901760, %v224_v52  ;;  %v244_v62 = vand.u32 4294901760, %v1470_v32  ;;  %v1203_v5 = vpack.c.bf16 %v230_v45, %v223_v44  ;;  %v251_v14 = vand.u32 4294901760, %v1474_v36 }
  0x5c   :  { %1108 = vmatpush3.bf16.xpose.msra.mxu1 %v1446_v16  ;;  %1180 = vmatpush3.bf16.xpose.msra.mxu0 %v1446_v16  ;;  %v1128_v49 = vpack.c.bf16 %v218_v42, %v211_v41  ;;  %v232_v58 = vand.u32 4294901760, %v231_v53  ;;  %v238_v6 = vsub.f32 %v1468_v31, %v237_v59  ;;  %v258_v15 = vand.u32 4294901760, %v1476_v37 }
  0x5d   :  { %1109 = vmatprep.subr.bf16.mxu1 %v1358_v3  ;;  %1181 = vmatprep.subr.bf16.mxu0 %v1358_v3  ;;  %v1206_v18 = vpack.c.bf16 %v244_v62, %v237_v59  ;;  %v252_v19 = vsub.f32 %v1474_v36, %v251_v14  ;;  %v265_v33 = vand.u32 4294901760, %v1490_v46  ;;  %v272_v34 = vand.u32 4294901760, %v1492_v47 }
  0x5e   :  { %v1131_v63 = vpack.c.bf16 %v232_v58, %v225_v56  ;;  %v239_v12 = vand.u32 4294901760, %v238_v6  ;;  %v1209_v42 = vpack.c.bf16 %v258_v15, %v251_v14  ;;  %v279_v52 = vand.u32 4294901760, %v1502_v54 }
  0x5f   :  { %v266_v44 = vsub.f32 %v1490_v46, %v265_v33  ;;  %v273_v45 = vsub.f32 %v1492_v47, %v272_v34  ;;  %v286_v53 = vand.u32 4294901760, %v1504_v55  ;;  %v1212_v58 = vpack.c.bf16 %v272_v34, %v265_v33 }
  0x60   :  { %v280_v59 = vsub.f32 %v1502_v54, %v279_v52  ;;  %v293_v6 = vand.u32 4294901760, %v1519_v1 }
  0x62   :  { %v294_v14 = vsub.f32 %v1519_v1, %v293_v6 }
  0x64   :  { %1111 = vmatpush3.bf16.xpose.msra.mxu1 %v1464_v29  ;;  %1183 = vmatpush3.bf16.xpose.msra.mxu0 %v1464_v29 }
  0x65   :  { %1112 = vmatprep.subr.bf16.mxu1 %v1358_v3  ;;  %1184 = vmatprep.subr.bf16.mxu0 %v1358_v3 }
  0x6c   :  { %1114 = vmatpush3.bf16.xpose.msra.mxu1 %v1488_v43  ;;  %1186 = vmatpush3.bf16.xpose.msra.mxu0 %v1488_v43 }
  0x6d   :  { %1115 = vmatprep.subr.bf16.mxu1 %v1358_v3  ;;  %1187 = vmatprep.subr.bf16.mxu0 %v1358_v3 }
  0x74   :  { %1117 = vmatpush3.bf16.xpose.msra.mxu1 %v1500_v51  ;;  %1189 = vmatpush3.bf16.xpose.msra.mxu0 %v1500_v51 }
  0x75   :  { %1118 = vmatprep.subr.bf16.mxu1 %v1358_v3  ;;  %1190 = vmatprep.subr.bf16.mxu0 %v1358_v3 }
  0x7c   :  { %1120 = vmatpush3.bf16.xpose.msra.mxu1 %v1517_v61  ;;  %1192 = vmatpush3.bf16.xpose.msra.mxu0 %v1517_v61 }
  0x7d   :  { %1121 = vmatprep.subr.bf16.mxu1 %v1358_v3  ;;  %1193 = vmatprep.subr.bf16.mxu0 %v1358_v3 }
  0x84   :  { %1123 = vmatpush3.bf16.xpose.msra.mxu1 %v1535_v10  ;;  %1195 = vmatpush3.bf16.xpose.msra.mxu0 %v1535_v10 }
  0x85   :  { %1124 = vmatprep.subr.bf16.mxu1 %v1358_v3  ;;  %1196 = vmatprep.subr.bf16.mxu0 %v1358_v3 }
  0x8b   :  { %923 = vmatmul.mubr.f32.vlgmr.msra.gmra.mrb[0].mxu1 %v186_v20  ;;  %1028 = vmatmul.mubr.f32.vlgmr.msra.gmra.mrb[0].mxu0 %v184_v9  ;;  %v245_v9 = vsub.f32 %v1470_v32, %v244_v62  ;;  %v259_v20 = vsub.f32 %v1476_v37, %v258_v15  ;;  %v287_v62 = vsub.f32 %v1504_v55, %v286_v53 }
  0x8c   :  { %1126 = vmatpush3.bf16.xpose.msra.mxu1 %v1125_v23  ;;  %1198 = vmatpush3.bf16.xpose.msra.mxu0 %v1197_v24  ;;  %v253_v23 = vand.u32 4294901760, %v252_v19 }
  0x8d   :  { %1127 = vmatprep.subr.bf16.mxu1 %v1358_v3  ;;  %1199 = vmatprep.subr.bf16.mxu0 %v1358_v3  ;;  %v246_v13 = vand.u32 4294901760, %v245_v9  ;;  %v260_v24 = vand.u32 4294901760, %v259_v20  ;;  %v300_v9 = vand.u32 4294901760, %v1521_v2 }
  0x8e   :  { %957 = vmatprep.mubr.msk.f32.mxu1 %vm1359_vm0, %v1356_v0  ;;  %1062 = vmatprep.mubr.msk.f32.mxu0 %vm1359_vm0, %v1356_v0 }
  0x8f   :  { %v1134_v17 = vpack.c.bf16 %v246_v13, %v239_v12  ;;  %v1137_v41 = vpack.c.bf16 %v260_v24, %v253_v23  ;;  %v1215_v13 = vpack.c.bf16 %v286_v53, %v279_v52  ;;  %v301_v15 = vsub.f32 %v1521_v2, %v300_v9 }
  0x90   :  { %v1218_v20 = vpack.c.bf16 %v300_v9, %v293_v6 }
  0x94   :  { %1129 = vmatpush3.bf16.xpose.msra.mxu1 %v1128_v49  ;;  %1201 = vmatpush3.bf16.xpose.msra.mxu0 %v1200_v50  ;;  %v267_v49 = vand.u32 4294901760, %v266_v44  ;;  %v274_v50 = vand.u32 4294901760, %v273_v45 }
  0x95   :  { %1130 = vmatprep.subr.bf16.mxu1 %v1358_v3  ;;  %1202 = vmatprep.subr.bf16.mxu0 %v1358_v3 }
  0x96   :  { %v1140_v56 = vpack.c.bf16 %v274_v50, %v267_v49 }
  0x9c   :  { %1132 = vmatpush3.bf16.xpose.msra.mxu1 %v1131_v63  ;;  %1204 = vmatpush3.bf16.xpose.msra.mxu0 %v1203_v5  ;;  %v281_v63 = vand.u32 4294901760, %v280_v59  ;;  %v288_v5 = vand.u32 4294901760, %v287_v62 }
  0x9d   :  { %1133 = vmatprep.subr.bf16.mxu1 %v1358_v3  ;;  %1205 = vmatprep.subr.bf16.mxu0 %v1358_v3 }
  0x9e   :  { %v1143_v12 = vpack.c.bf16 %v288_v5, %v281_v63 }
  0xa4   :  { %1135 = vmatpush3.bf16.xpose.msra.mxu1 %v1134_v17  ;;  %1207 = vmatpush3.bf16.xpose.msra.mxu0 %v1206_v18  ;;  %v295_v17 = vand.u32 4294901760, %v294_v14  ;;  %v302_v18 = vand.u32 4294901760, %v301_v15 }
  0xa5   :  { %1136 = vmatprep.subr.bf16.mxu1 %v1358_v3  ;;  %1208 = vmatprep.subr.bf16.mxu0 %v1358_v3 }
  0xa6   :  { %v1146_v19 = vpack.c.bf16 %v302_v18, %v295_v17 }
  0xac   :  { %1138 = vmatpush3.bf16.xpose.msra.mxu1 %v1137_v41  ;;  %1210 = vmatpush3.bf16.xpose.msra.mxu0 %v1209_v42 }
  0xad   :  { %1139 = vmatprep.subr.bf16.mxu1 %v1358_v3  ;;  %1211 = vmatprep.subr.bf16.mxu0 %v1358_v3 }
  0xb4   :  { %1141 = vmatpush3.bf16.xpose.msra.mxu1 %v1140_v56  ;;  %1213 = vmatpush3.bf16.xpose.msra.mxu0 %v1212_v58 }
  0xb5   :  { %1142 = vmatprep.subr.bf16.mxu1 %v1358_v3  ;;  %1214 = vmatprep.subr.bf16.mxu0 %v1358_v3 }
  0xbc   :  { %1144 = vmatpush3.bf16.xpose.msra.mxu1 %v1143_v12  ;;  %1216 = vmatpush3.bf16.xpose.msra.mxu0 %v1215_v13 }
  0xbd   :  { %1145 = vmatprep.subr.bf16.mxu1 %v1358_v3  ;;  %1217 = vmatprep.subr.bf16.mxu0 %v1358_v3 }
  0xc4   :  { %1147 = vmatpush3.bf16.xpose.msra.mxu1 %v1146_v19  ;;  %1219 = vmatpush3.bf16.xpose.msra.mxu0 %v1218_v20 }
  0xc5   :  { %1148 = vmatprep.subr.bf16.mxu1 %v1358_v3  ;;  %1220 = vmatprep.subr.bf16.mxu0 %v1358_v3 }
  0xcb   :  { %958 = vmatmul.mubr.f32.vlgmr.msra.gmra.mrb[0].mxu1 %v1515_v60  ;;  %1063 = vmatmul.mubr.f32.vlgmr.msra.gmra.mrb[0].mxu0 %v1515_v60 }
  0xcc   :  { %1150 = vmatpush3.bf16.xpose.msra.mxu1 %v1149_v30  ;;  %1222 = vmatpush3.bf16.xpose.msra.mxu0 %v1434_v8 }
  0xcd   :  { %1151 = vmatprep.subr.bf16.mxu1 %v1358_v3  ;;  %1223 = vmatprep.subr.bf16.mxu0 %v1358_v3 }
  0xce   :  { %992 = vmatprep.mubr.msk.f32.mxu1 %vm1359_vm0, %v1356_v0  ;;  %1097 = vmatprep.mubr.msk.f32.mxu0 %vm1359_vm0, %v1356_v0  ;;  %v100_v0 = vstv %s99_s2 }
  0xd4   :  { %1153 = vmatpush3.bf16.xpose.msra.mxu1 %v1152_v35  ;;  %1225 = vmatpush3.bf16.xpose.msra.mxu0 %v1440_v11 }
  0xd5   :  { %1154 = vmatprep.subr.bf16.mxu1 %v1358_v3  ;;  %1226 = vmatprep.subr.bf16.mxu0 %v1358_v3 }
  0xdc   :  { %1156 = vmatpush3.bf16.xpose.msra.mxu1 %v1155_v38  ;;  %1228 = vmatpush3.bf16.xpose.msra.mxu0 %v1446_v16 }
  0xdd   :  { %1157 = vmatprep.subr.bf16.mxu1 %v1358_v3  ;;  %1229 = vmatprep.subr.bf16.mxu0 %v1358_v3 }
  0xe4   :  { %1159 = vmatpush3.bf16.xpose.msra.mxu1 %v1158_v39  ;;  %1231 = vmatpush3.bf16.xpose.msra.mxu0 %v1464_v29 }
  0xe5   :  { %1160 = vmatprep.subr.bf16.mxu1 %v1358_v3  ;;  %1232 = vmatprep.subr.bf16.mxu0 %v1358_v3 }
  0xec   :  { %1162 = vmatpush3.bf16.xpose.msra.mxu1 %v1161_v40  ;;  %1234 = vmatpush3.bf16.xpose.msra.mxu0 %v1488_v43 }
  0xed   :  { %1163 = vmatprep.subr.bf16.mxu1 %v1358_v3  ;;  %1235 = vmatprep.subr.bf16.mxu0 %v1358_v3 }
  0xf4   :  { %1165 = vmatpush3.bf16.xpose.msra.mxu1 %v1164_v48  ;;  %1237 = vmatpush3.bf16.xpose.msra.mxu0 %v1500_v51 }
  0xf5   :  { %1166 = vmatprep.subr.bf16.mxu1 %v1358_v3  ;;  %1238 = vmatprep.subr.bf16.mxu0 %v1358_v3 }
  0xfc   :  { %1168 = vmatpush3.bf16.xpose.msra.mxu1 %v1167_v57  ;;  %1240 = vmatpush3.bf16.xpose.msra.mxu0 %v1517_v61 }
  0xfd   :  { %1169 = vmatprep.subr.bf16.mxu1 %v1358_v3  ;;  %1241 = vmatprep.subr.bf16.mxu0 %v1358_v3 }
 0x104   :  { %1171 = vmatpush3.bf16.xpose.msra.mxu1 %v1170_v7  ;;  %1243 = vmatpush3.bf16.xpose.msra.mxu0 %v1535_v10 }
 0x10b   :  { %993 = vmatmul.mubr.f32.vlgmr.msra.gmra.mrb[0].mxu1 %v1524_v4  ;;  %1098 = vmatmul.mubr.f32.vlgmr.msra.gmra.mrb[0].mxu0 %v1515_v60 }
 0x1de   :  { %v443_v8 = vpop.f32.mrb[0].mxu1  ;;  %v738_v11 = vpop.f32.mrb[0].mxu0 }
 0x1df   :  { %v1244_v16 = vadd.f32 %v443_v8, %v100_v0  ;;  %v994_v21 = vpop.f32.mrb[1].mxu1  ;;  %v1099_v22 = vpop.f32.mrb[1].mxu0 }
 0x1e1   :  { %v1245_v3 = vadd.f32 %v1244_v16, %v738_v11 }
 0x1e3   :  { %742 = vst [vmem:[#allocation7] sm:$0x1] %v1245_v3 }
 0x1e4   :  { %1322 = shalt.err (!%p1319_p11)
}
 0x1e5   :  { %s1323_s0 = scalar_lea.hbm %s1662_s4, 16 }
 0x1e6   :  { %p1324_p12 = scmp.ne.s32.totalorder %s1662_s4, %s1323_s0  ;;  %p1327_p13 = scmp.lt.u32.totalorder %s1323_s0, %s1662_s4 }
 0x1e8   :  { %p1329_p0 = pnand %p1327_p13, %p1324_p12 }
 0x1ea   :  { %1332 = shalt.err (!%p1329_p0)
}
 0x1eb   :  { %752 = dma.vmem_to_hbm [thread:$0]  %s750_s17, 16, %s1662_s4, [#allocation8]  }
 0x1ec   :  { %1345 = dma.done.wait [#allocation8], 16  }
 0x1ed   :  { %1346 = vsyncadd [#allocation8], 4294967280 }
 0x1ee   :  { %756 = vsyncpa [#allocation8], 1 }
 0x1ef   :  { %757 = vsyncmov [#allocation3] }
 0x1f2   :  { %s758_s27 = vpop.sfrf %757 }
 0x1f3   :  { %p785_p1 = scmp.ne.s32.totalorder %s758_s27, 0 }
 0x1f5   :  { %762 = shalt.err (%p785_p1)  }

</bundles_post_ra>
